<compile_context>
chip_gen: v7x
topology: tpu7x:2x2x1
jax: 0.10.0
libtpu: 0.0.40
codegen_flags: <defaults>
</compile_context>

<pallas_src>
import functools

import jax
import jax.numpy as jnp
from jax.experimental import pallas as pl
from jax.experimental.pallas import tpu as pltpu

_SUBLANE = 8
_LANE = 128


def _round_up(n, m):
    return ((n + m - 1) // m) * m


def _gap_kernel(x_ref, o_ref, *, inv_hw, hw, tile_hw, mask_tail):
    # x_ref: (tile_r, tile_hw)   o_ref: (tile_r, 1) f32 accumulator (resident across k)
    k = pl.program_id(1)

    @pl.when(k == 0)
    def _init():
        o_ref[...] = jnp.zeros_like(o_ref)

    x = x_ref[...].astype(jnp.float32)            # accumulate in f32
    if mask_tail:                                 # static flag: only for ragged HW tail
        lane = jax.lax.broadcasted_iota(jnp.int32, x.shape, 1)
        x = jnp.where(k * tile_hw + lane < hw, x, 0.0)
    o_ref[...] += jnp.sum(x, axis=-1, keepdims=True)   # XLU cross-lane reduce

    @pl.when(k == pl.num_programs(1) - 1)
    def _finalize():
        o_ref[...] *= inv_hw


def encoder_forward(x_nchw, *, backbone_fn=None, per_buffer_budget_bytes=8 << 20):
    """Forward pass of Encoder: backbone -> global average pool -> flatten.

    x_nchw: (B, C, H, W). Returns (B, C) in x's dtype.
    """
    # TODO(synk): `backbone` is an arbitrary nn.Module passed to Encoder.__init__;
    # there is no generic Pallas translation, so apply it as a plain-JAX callable.
    if backbone_fn is not None:
        x_nchw = backbone_fn(x_nchw)

    B, C, H, W = x_nchw.shape
    HW = H * W
    R = B * C
    itemsize = jnp.dtype(x_nchw.dtype).itemsize

    # (B, C, H, W) -> (B*C, H*W): free reshape of contiguous dims; decouples
    # tile sizing from C and keeps sublanes fully packed for small C.
    x2d = x_nchw.reshape(R, HW)

    # ---- tile selection against the per-input-buffer VMEM budget ----
    if HW * _SUBLANE * itemsize <= per_buffer_budget_bytes:
        tile_hw = HW                               # whole reduction axis in one block
    else:
        tile_hw = (per_buffer_budget_bytes // (_SUBLANE * itemsize)) // _LANE * _LANE
        tile_hw = max(_LANE, min(tile_hw, _round_up(HW, _LANE)))

    r_ceil = _round_up(R, _SUBLANE)
    rows_fit = max(
        _SUBLANE,
        (per_buffer_budget_bytes // (tile_hw * itemsize)) // _SUBLANE * _SUBLANE)
    tile_r = min(rows_fit, r_ceil)
    if tile_r >= r_ceil and R > _SUBLANE:
        # Split rows so the "parallel" axis has >= 2 programs: both TensorCores
        # stream on v7x and tile i+1 prefetch overlaps tile i on every chip.
        tile_r = max(_SUBLANE, _round_up((R + 1) // 2, _SUBLANE))

    grid = (pl.cdiv(R, tile_r), pl.cdiv(HW, tile_hw))
    mask_tail = (tile_hw != HW) and (HW % tile_hw != 0)

    # 2 input buffers (double-buffered) + 2 tiny output buffers + slack,
    # clamped to [16 MiB, 32 MiB] -> within the scoped VMEM of every chip.
    in_block_bytes = tile_r * tile_hw * itemsize
    out_block_bytes = tile_r * 4
    vmem_limit_bytes = int(min(
        max(2 * (in_block_bytes + out_block_bytes) + (1 << 20), 16 << 20),
        32 << 20))

    kernel = functools.partial(
        _gap_kernel, inv_hw=1.0 / float(HW), hw=HW, tile_hw=tile_hw,
        mask_tail=mask_tail)

    cost = pl.CostEstimate(
        flops=2 * R * HW,                          # sum + scale
        transcendentals=0,
        bytes_accessed=R * HW * itemsize + R * 4,
    )

    out = pl.pallas_call(
        kernel,
        out_shape=jax.ShapeDtypeStruct((R, 1), jnp.float32),
        grid=grid,
        in_specs=[pl.BlockSpec((tile_r, tile_hw), lambda i, k: (i, k))],
        out_specs=pl.BlockSpec((tile_r, 1), lambda i, k: (i, 0)),
        compiler_params=pltpu.CompilerParams(
            dimension_semantics=("parallel", "arbitrary"),
            vmem_limit_bytes=vmem_limit_bytes,
            allow_input_fusion=[True],
        ),
        cost_estimate=cost,
    )(x2d)

    return out.reshape(B, C).astype(x_nchw.dtype)


def encoder_reference(x_nchw, *, backbone_fn=None):
    if backbone_fn is not None:
        x_nchw = backbone_fn(x_nchw)
    # AdaptiveAvgPool2d((1,1)) + Flatten == mean over spatial dims
    return jnp.mean(x_nchw, axis=(2, 3))


if __name__ == "__main__":
    key = jax.random.PRNGKey(0)
    k1, k2, k3 = jax.random.split(key, 3)

    # Demo shape: batch=2, channels=4, spatial 16x16 (backbone = identity).
    x = jax.random.normal(k1, (2, 4, 16, 16), jnp.float32)
    out = jax.block_until_ready(encoder_forward(x))
    ref = encoder_reference(x)
    assert out.shape == (2, 4), f"unexpected output shape {out.shape}"
    assert jnp.allclose(out, ref, atol=1e-5, rtol=1e-5), "mismatch vs. reference"

    # Ragged rows (B*C=15 not a multiple of 8) + >=2 row tiles.
    x2 = jax.random.normal(k2, (3, 5, 10, 10), jnp.float32)
    out2 = jax.block_until_ready(encoder_forward(x2))
    ref2 = encoder_reference(x2)
    assert out2.shape == (3, 5) and jnp.allclose(out2, ref2, atol=1e-5, rtol=1e-5), \
        "mismatch vs. reference (ragged rows)"

    # Force HW tiling + in-kernel tail masking with a tiny VMEM budget.
    x3 = jax.random.normal(k3, (2, 3, 10, 30), jnp.float32)
    out3 = jax.block_until_ready(
        encoder_forward(x3, per_buffer_budget_bytes=4096))
    ref3 = encoder_reference(x3)
    assert out3.shape == (2, 3) and jnp.allclose(out3, ref3, atol=1e-5, rtol=1e-5), \
        "mismatch vs. reference (tiled + masked HW)"

    print("KERNEL_OK")
</pallas_src>

<mosaic_0001>
module attributes {stable_mosaic.version = 11 : i64} {
  func.func @_gap_kernel(%arg0: i32, %arg1: i32, %arg2: memref<8x256xf32, #tpu.memory_space<vmem>>, %arg3: memref<8x1xf32, #tpu.memory_space<vmem>>) attributes {dimension_semantics = [#tpu.dimension_semantics<parallel>, #tpu.dimension_semantics<arbitrary>], iteration_bounds = array<i64: 1, 1>, scalar_prefetch = 0 : i64, scratch_operands = 0 : i64, tpu.core_type = #tpu.core_type<tc>, window_params = [{transform_indices = @transform_0, window_bounds = array<i64: 8, 256>}, {transform_indices = @transform_1, window_bounds = array<i64: 8, 1>}]} {
    %c0_i32 = arith.constant 0 : i32
    %0 = arith.cmpi eq, %arg1, %c0_i32 : i32
    %1 = arith.extui %0 : i1 to i32
    %c0_i32_0 = arith.constant 0 : i32
    %2 = arith.cmpi ne, %1, %c0_i32_0 : i32
    scf.if %2 {
      %cst_8 = arith.constant 0.000000e+00 : f32
      %12 = vector.broadcast %cst_8 : f32 to vector<8x1xf32>
      %c0_9 = arith.constant 0 : index
      %c0_10 = arith.constant 0 : index
      %13 = vector.load %arg3[%c0_9, %c0_10] : memref<8x1xf32, #tpu.memory_space<vmem>>, vector<8x1xf32>
      tpu.vector_store %arg3[%c0_9, %c0_10], %12 {strides = array<i32>} : memref<8x1xf32, #tpu.memory_space<vmem>>, vector<8x1xf32>,
    } else {
    }
    %c0 = arith.constant 0 : index
    %c0_1 = arith.constant 0 : index
    %3 = vector.load %arg2[%c0, %c0_1] : memref<8x256xf32, #tpu.memory_space<vmem>>, vector<8x256xf32>
    %c0_2 = arith.constant 0 : index
    %c0_3 = arith.constant 0 : index
    %4 = vector.load %arg3[%c0_2, %c0_3] : memref<8x1xf32, #tpu.memory_space<vmem>>, vector<8x1xf32>
    %cst = arith.constant dense<0.000000e+00> : vector<8xf32>
    %5 = vector.multi_reduction <add>, %3, %cst [1] : vector<8x256xf32> to vector<8xf32>
    %6 = vector.shape_cast %5 : vector<8xf32> to vector<8x1xf32>
    %7 = arith.addf %4, %6 : vector<8x1xf32>
    %c0_4 = arith.constant 0 : index
    %c0_5 = arith.constant 0 : index
    %8 = vector.load %arg3[%c0_4, %c0_5] : memref<8x1xf32, #tpu.memory_space<vmem>>, vector<8x1xf32>
    tpu.vector_store %arg3[%c0_4, %c0_5], %7 {strides = array<i32>} : memref<8x1xf32, #tpu.memory_space<vmem>>, vector<8x1xf32>,
    %c0_i32_6 = arith.constant 0 : i32
    %9 = arith.cmpi eq, %arg1, %c0_i32_6 : i32
    %10 = arith.extui %9 : i1 to i32
    %c0_i32_7 = arith.constant 0 : i32
    %11 = arith.cmpi ne, %10, %c0_i32_7 : i32
    scf.if %11 {
      %c0_8 = arith.constant 0 : index
      %c0_9 = arith.constant 0 : index
      %12 = vector.load %arg3[%c0_8, %c0_9] : memref<8x1xf32, #tpu.memory_space<vmem>>, vector<8x1xf32>
      %cst_10 = arith.constant 3.906250e-03 : f32
      %13 = vector.broadcast %cst_10 : f32 to vector<8x1xf32>
      %14 = arith.mulf %12, %13 : vector<8x1xf32>
      %c0_11 = arith.constant 0 : index
      %c0_12 = arith.constant 0 : index
      %15 = vector.load %arg3[%c0_11, %c0_12] : memref<8x1xf32, #tpu.memory_space<vmem>>, vector<8x1xf32>
      tpu.vector_store %arg3[%c0_11, %c0_12], %14 {strides = array<i32>} : memref<8x1xf32, #tpu.memory_space<vmem>>, vector<8x1xf32>,
    } else {
    }
    return
  }
  func.func @transform_0(%arg0: i32, %arg1: i32) -> (i32, i32) {
    %c0_i32 = arith.constant 0 : i32
    return %arg0, %arg1 : i32, i32
  }
  func.func @transform_1(%arg0: i32, %arg1: i32) -> (i32, i32) {
    %c0_i32 = arith.constant 0 : i32
    %c0_i32_0 = arith.constant 0 : i32
    return %arg0, %c0_i32 : i32, i32
  }
}

</mosaic_0001>

<bundles_post_ra>
// kernel: tpu_custom_call.1
= control target key start
LH: loop header
LB: loop body
LE: loop exit
PB: predicated region body
PF: predicated region fallthrough
CT: control target
= control target key end

     0   :  { %6 = vsyncpa [#allocation3], 0  ;;  %s72_s6 = smov [#allocation2]   ;;  %s111_s0 = inlined_call_operand.hbm [shape: f32[8,256], index: 0, kind: input, shape index: {}]   ;;  %s112_s1 = inlined_call_operand.vmem [shape: f32[8,1], index: 1, kind: output, shape index: {}]  }
   0x1   :  { %s13_s7 = sshll.u32 %s72_s6, 4  ;;  %s48_s10 = scalar_lea.hbm %s111_s0, 256  ;;  %s14_s7 = int_to_ptr.vmem [resolvable:$true] %s13_s7 }
   0x2   :  { %p49_p0 = scmp.ne.s32.totalorder %s111_s0, %s48_s10  ;;  %p52_p1 = scmp.lt.u32.totalorder %s48_s10, %s111_s0 }
   0x4   :  { %p54_p2 = pnand %p52_p1, %p49_p0 }
   0x6   :  { %57 = shalt.err (!%p54_p2)
}
   0x7   :  { %s58_s15 = scalar_lea.vmem %s14_s7, 256  ;;  %p63_p4 = scmp.lt.s32.totalorder %s14_s7, %s14_s7 }
   0x8   :  { %p59_p3 = scmp.ne.s32.totalorder %s14_s7, %s58_s15  ;;  %p64_p5 = scmp.lt.s32.totalorder %s58_s15, %s58_s15 }
   0xa   :  { %p65_p6 = por %p64_p5, %p63_p4 }
   0xc   :  { %p66_p7 = pnand %p65_p6, %p59_p3 }
   0xe   :  { %69 = shalt.err (!%p66_p7)
}
   0xf   :  { %16 = dma.hbm_to_vmem [thread:$0]  %s111_s0, 256, %s14_s7, [#allocation3]  }
  0x10   :  { %70 = dma.done.wait [#allocation3], 256  }
  0x11   :  { %71 = vsyncadd [#allocation3], 4294967040  ;;  %vm24_vm0 = vcmask 7168   ;;  %v73_v0 = vmov 0.0   ;;  %v26_v1 = vld [vmem:[#allocation2] sm:$0xff]  ;;  %v27_v2 = vld [vmem:[#allocation2 + $0x8] sm:$0xff] }
  0x12   :  { %25 = vst.msk [vmem:[%s112_s1] sm:$0xff] %vm24_vm0, %v73_v0  ;;  %v29_v3 = vadd.f32 %v27_v2, %v26_v1 }
  0x14   :  { %30 = vadd.xlane.f32.xlu0 %v29_v3 }
  0x19   :  { %v28_v4 = vld [vmem:[%s112_s1] sm:$0xff] }
  0xa1   :  { %v31_v5 = vpop.xlane.xlu0 %30 }
  0xa2   :  { %v32_v6 = vadd.f32 %v31_v5, %v28_v4 }
  0xa4   :  { %34 = vst.msk [vmem:[%s112_s1] sm:$0xff] %vm24_vm0, %v32_v6 }
  0xab   :  { %v38_v7 = vld [vmem:[%s112_s1] sm:$0xff] }
  0xac   :  { %v39_v8 = vmul.f32 0.00390625, %v38_v7 }
  0xae   :  { %40 = vst.msk [vmem:[%s112_s1] sm:$0xff] %vm24_vm0, %v39_v8 }
  0xaf   :  { %45 = vsyncpa [#allocation3], 1 }

</bundles_post_ra>
